<compile_context>
chip_gen: v5e
topology: v5e:2x2
jax: 0.10.0
libtpu: 0.0.40
codegen_flags: <defaults>
</compile_context>

<pallas_src>
import jax
import jax.numpy as jnp
from jax.experimental import pallas as pl
from jax.experimental.pallas import tpu as pltpu

NUM_CLASSES = 3
CLASS_PAD = 128        # lane-dense padded class axis used *inside* the kernel
NEG_BIG = -1e30        # f32 bias for padded classes -> exp underflows to exactly 0


def mlp_kernel(x_ref, w1_ref, b1_ref, w2_ref, b2_ref, w3_ref, b3_ref, o_ref):
    """Forward pass for one batch tile; weights are resident across the grid.

    w*/b* already have BatchNorm folded in (inference semantics); Dropout(0.2)
    is identity in eval mode.  Matmul inputs are bf16, accumulation and all
    elementwise math (bias, ReLU, softmax) stay in f32.  Only the 3 real class
    columns are stored.
    """
    # x arrives in f32 from HBM; cast to bf16 in-kernel (VALU op, ample slack).
    x = x_ref[...].astype(w1_ref.dtype)

    # Layer 1: Linear(F, 64) [BN folded] -> ReLU
    h1 = jnp.dot(x, w1_ref[...], preferred_element_type=jnp.float32) + b1_ref[...]
    h1 = jnp.maximum(h1, 0.0)

    # Layer 2: Linear(64, 32) [BN folded] -> ReLU
    h2 = jnp.dot(h1.astype(w2_ref.dtype), w2_ref[...],
                 preferred_element_type=jnp.float32) + b2_ref[...]
    h2 = jnp.maximum(h2, 0.0)

    # Head: Linear(32, 3 padded to 128) -> Softmax (padded classes have -1e30
    # bias, so they contribute exactly 0 to the denominator).
    logits = jnp.dot(h2.astype(w3_ref.dtype), w3_ref[...],
                     preferred_element_type=jnp.float32) + b3_ref[...]
    m = jnp.max(logits, axis=-1, keepdims=True)
    e = jnp.exp(logits - m)
    denom = jnp.sum(e, axis=-1, keepdims=True)
    # Exact divide (rows sum to 1 within f32 rounding); narrow store of the
    # 3 real classes only -> (tb, 3) f32 out tile, no wrapper slice needed.
    o_ref[...] = e[:, :NUM_CLASSES] / denom


def init_params(key, input_size, hidden_sizes=(64, 32), num_classes=NUM_CLASSES):
    """Deterministic PyTorch-like init + BN params/running stats (folded to s/t)."""
    sizes = [input_size] + list(hidden_sizes) + [num_classes]
    params = {}
    keys = jax.random.split(key, 4 * len(hidden_sizes) + 2)
    ki = 0
    eps = 1e-5
    for li in range(len(sizes) - 1):
        fan_in, fan_out = sizes[li], sizes[li + 1]
        bound = 1.0 / jnp.sqrt(jnp.float32(fan_in))
        w = jax.random.uniform(keys[ki], (fan_in, fan_out), jnp.float32, -bound, bound); ki += 1
        b = jax.random.uniform(keys[ki], (1, fan_out), jnp.float32, -bound, bound); ki += 1
        params[f"w{li+1}"] = w
        params[f"b{li+1}"] = b
        if li < len(hidden_sizes):
            gamma = 1.0 + 0.1 * jax.random.normal(keys[ki], (1, fan_out), jnp.float32); ki += 1
            beta = 0.05 * jax.random.normal(keys[ki], (1, fan_out), jnp.float32); ki += 1
            running_mean = jnp.zeros((1, fan_out), jnp.float32)
            running_var = jnp.ones((1, fan_out), jnp.float32)
            scale = gamma / jnp.sqrt(running_var + eps)          # s
            shift = beta - running_mean * scale                  # t
            params[f"s{li+1}"] = scale
            params[f"t{li+1}"] = shift
    return params


def fold_and_pad_params(params, compute_dtype=jnp.bfloat16):
    """Fold eval-mode BN into the Linears and pad the class axis to 128 lanes."""
    w1 = params["w1"] * params["s1"]                         # (F, 64) * (1, 64)
    b1 = params["b1"] * params["s1"] + params["t1"]
    w2 = params["w2"] * params["s2"]
    b2 = params["b2"] * params["s2"] + params["t2"]
    w3, b3 = params["w3"], params["b3"]
    h2 = w3.shape[0]
    w3p = jnp.zeros((h2, CLASS_PAD), jnp.float32).at[:, :NUM_CLASSES].set(w3)
    # NEG_BIG biases stay f32 (bf16 would saturate to -inf -> NaN edge cases).
    b3p = jnp.full((1, CLASS_PAD), NEG_BIG, jnp.float32).at[:, :NUM_CLASSES].set(b3)
    return dict(
        w1=w1.astype(compute_dtype), b1=b1.astype(jnp.float32),
        w2=w2.astype(compute_dtype), b2=b2.astype(jnp.float32),
        w3=w3p.astype(compute_dtype), b3=b3p.astype(jnp.float32),
    )


def _pick_batch_tile(B, tile_b):
    """Batch tile: multiple of 16 (or == B), >=2 grid steps when possible so
    the 'parallel' batch axis can split across v7x's two TensorCores."""
    if B < 32:
        return B                              # single full-block tile
    half = pl.cdiv(B, 2)                      # aim for at least 2 grid steps
    half = ((half + 15) // 16) * 16           # keep sublane-friendly multiple of 16
    return max(16, min(tile_b, half))


def neural_trading_forward(x, params, *, compute_dtype=jnp.bfloat16, tile_b=4096,
                           small_batch_jax_threshold=0):
    """Eval-mode forward. If B < small_batch_jax_threshold, dispatch the fused
    pure-JAX path instead (kernel launch overhead dwarfs ~100 KFLOPs of work)."""
    B, F = x.shape
    if B < small_batch_jax_threshold:
        return reference_forward(x, params)

    kp = fold_and_pad_params(params, compute_dtype)

    tb = _pick_batch_tile(B, tile_b)
    grid = (pl.cdiv(B, tb),)

    def resident(shape):
        # Weights/biases: same (only) block for every grid step -> stay in VMEM.
        return pl.BlockSpec(shape, lambda i: (0, 0))

    weight_bytes = (kp["w1"].size + kp["w2"].size + kp["w3"].size) * 2 \
                 + (kp["b1"].size + kp["b2"].size + kp["b3"].size) * 4
    cost = pl.CostEstimate(
        flops=2 * B * (F * 64 + 64 * 32 + 32 * CLASS_PAD),
        transcendentals=B * CLASS_PAD,
        bytes_accessed=B * F * 4 + B * NUM_CLASSES * 4 + weight_bytes,
    )

    out = pl.pallas_call(
        mlp_kernel,
        out_shape=jax.ShapeDtypeStruct((B, NUM_CLASSES), jnp.float32),
        grid=grid,
        in_specs=[
            pl.BlockSpec((tb, F), lambda i: (i, 0)),         # x tile (pipelined)
            resident(kp["w1"].shape), resident(kp["b1"].shape),
            resident(kp["w2"].shape), resident(kp["b2"].shape),
            resident(kp["w3"].shape), resident(kp["b3"].shape),
        ],
        out_specs=pl.BlockSpec((tb, NUM_CLASSES), lambda i: (i, 0)),  # narrow f32 store
        compiler_params=pltpu.CompilerParams(
            dimension_semantics=("parallel",)),              # megacore on v7x
        cost_estimate=cost,
    )(x, kp["w1"], kp["b1"], kp["w2"], kp["b2"], kp["w3"], kp["b3"])

    return out


def reference_forward(x, params):
    """Pure-JAX f32 reference (unfolded BN) for correctness check / tiny-batch path."""
    h1 = jnp.maximum((x @ params["w1"] + params["b1"]) * params["s1"] + params["t1"], 0.0)
    h2 = jnp.maximum((h1 @ params["w2"] + params["b2"]) * params["s2"] + params["t2"], 0.0)
    logits = h2 @ params["w3"] + params["b3"]
    return jax.nn.softmax(logits, axis=1)


if __name__ == "__main__":
    # TODO(synk): train-mode Dropout (random mask) and the Adam training loop are
    # omitted — eval-mode (deterministic) forward is implemented instead.
    B, INPUT_SIZE = 8, 16
    key = jax.random.PRNGKey(0)
    kx, kp = jax.random.split(key)
    x = jax.random.normal(kx, (B, INPUT_SIZE), jnp.float32)
    params = init_params(kp, INPUT_SIZE, hidden_sizes=(64, 32), num_classes=NUM_CLASSES)

    out = neural_trading_forward(x, params)
    out = jax.block_until_ready(out)

    ref = reference_forward(x, params)
    assert out.shape == (B, NUM_CLASSES)
    # Exact f32 softmax divide -> rows sum to 1 within f32 rounding.
    assert jnp.allclose(jnp.sum(out, axis=1), 1.0, atol=1e-5)
    # bf16 matmuls -> relaxed tolerances vs the f32 reference.
    assert jnp.allclose(out, ref, atol=2e-2, rtol=2e-2)
    print("KERNEL_OK")
</pallas_src>

<mosaic_0001>
module attributes {stable_mosaic.version = 11 : i64} {
  func.func @mlp_kernel(%arg0: i32, %arg1: memref<8x16xf32, #tpu.memory_space<vmem>>, %arg2: memref<16x64xbf16, #tpu.memory_space<vmem>>, %arg3: memref<1x64xf32, #tpu.memory_space<vmem>>, %arg4: memref<64x32xbf16, #tpu.memory_space<vmem>>, %arg5: memref<1x32xf32, #tpu.memory_space<vmem>>, %arg6: memref<32x128xbf16, #tpu.memory_space<vmem>>, %arg7: memref<1x128xf32, #tpu.memory_space<vmem>>, %arg8: memref<8x3xf32, #tpu.memory_space<vmem>>) attributes {dimension_semantics = [#tpu.dimension_semantics<parallel>], iteration_bounds = array<i64: 1>, scalar_prefetch = 0 : i64, scratch_operands = 0 : i64, tpu.core_type = #tpu.core_type<tc>, window_params = [{transform_indices = @transform_0, window_bounds = array<i64: 8, 16>}, {pipeline_mode = #tpu.pipeline_mode<synchronous>, transform_indices = @transform_1, window_bounds = array<i64: 16, 64>}, {pipeline_mode = #tpu.pipeline_mode<synchronous>, transform_indices = @transform_2, window_bounds = array<i64: 1, 64>}, {pipeline_mode = #tpu.pipeline_mode<synchronous>, transform_indices = @transform_3, window_bounds = array<i64: 64, 32>}, {pipeline_mode = #tpu.pipeline_mode<synchronous>, transform_indices = @transform_4, window_bounds = array<i64: 1, 32>}, {pipeline_mode = #tpu.pipeline_mode<synchronous>, transform_indices = @transform_5, window_bounds = array<i64: 32, 128>}, {pipeline_mode = #tpu.pipeline_mode<synchronous>, transform_indices = @transform_6, window_bounds = array<i64: 1, 128>}, {transform_indices = @transform_7, window_bounds = array<i64: 8, 3>}]} {
    %c0 = arith.constant 0 : index
    %c0_0 = arith.constant 0 : index
    %0 = vector.load %arg1[%c0, %c0_0] : memref<8x16xf32, #tpu.memory_space<vmem>>, vector<8x16xf32>
    %1 = arith.truncf %0 : vector<8x16xf32> to vector<8x16xbf16>
    %c0_1 = arith.constant 0 : index
    %c0_2 = arith.constant 0 : index
    %2 = vector.load %arg2[%c0_1, %c0_2] : memref<16x64xbf16, #tpu.memory_space<vmem>>, vector<16x64xbf16>
    %cst = arith.constant dense<0.000000e+00> : vector<8x64xf32>
    %3 = tpu.matmul %1, %2, %cst {dimension_numbers = #tpu.dot_dimension_numbers<[1], [0], [0], [1], [0, 0, 1, 1], [], []>} : vector<8x16xbf16>, vector<16x64xbf16>, vector<8x64xf32> -> vector<8x64xf32>
    %c0_3 = arith.constant 0 : index
    %c0_4 = arith.constant 0 : index
    %4 = vector.load %arg3[%c0_3, %c0_4] : memref<1x64xf32, #tpu.memory_space<vmem>>, vector<1x64xf32>
    %5 = vector.broadcast %4 : vector<1x64xf32> to vector<8x64xf32>
    %6 = arith.addf %3, %5 : vector<8x64xf32>
    %cst_5 = arith.constant 0.000000e+00 : f32
    %7 = vector.broadcast %cst_5 : f32 to vector<8x64xf32>
    %8 = arith.maximumf %6, %7 : vector<8x64xf32>
    %9 = arith.truncf %8 : vector<8x64xf32> to vector<8x64xbf16>
    %c0_6 = arith.constant 0 : index
    %c0_7 = arith.constant 0 : index
    %10 = vector.load %arg4[%c0_6, %c0_7] : memref<64x32xbf16, #tpu.memory_space<vmem>>, vector<64x32xbf16>
    %cst_8 = arith.constant dense<0.000000e+00> : vector<8x32xf32>
    %11 = tpu.matmul %9, %10, %cst_8 {dimension_numbers = #tpu.dot_dimension_numbers<[1], [0], [0], [1], [0, 0, 1, 1], [], []>} : vector<8x64xbf16>, vector<64x32xbf16>, vector<8x32xf32> -> vector<8x32xf32>
    %c0_9 = arith.constant 0 : index
    %c0_10 = arith.constant 0 : index
    %12 = vector.load %arg5[%c0_9, %c0_10] : memref<1x32xf32, #tpu.memory_space<vmem>>, vector<1x32xf32>
    %13 = vector.broadcast %12 : vector<1x32xf32> to vector<8x32xf32>
    %14 = arith.addf %11, %13 : vector<8x32xf32>
    %cst_11 = arith.constant 0.000000e+00 : f32
    %15 = vector.broadcast %cst_11 : f32 to vector<8x32xf32>
    %16 = arith.maximumf %14, %15 : vector<8x32xf32>
    %17 = arith.truncf %16 : vector<8x32xf32> to vector<8x32xbf16>
    %c0_12 = arith.constant 0 : index
    %c0_13 = arith.constant 0 : index
    %18 = vector.load %arg6[%c0_12, %c0_13] : memref<32x128xbf16, #tpu.memory_space<vmem>>, vector<32x128xbf16>
    %cst_14 = arith.constant dense<0.000000e+00> : vector<8x128xf32>
    %19 = tpu.matmul %17, %18, %cst_14 {dimension_numbers = #tpu.dot_dimension_numbers<[1], [0], [0], [1], [0, 0, 1, 1], [], []>} : vector<8x32xbf16>, vector<32x128xbf16>, vector<8x128xf32> -> vector<8x128xf32>
    %c0_15 = arith.constant 0 : index
    %c0_16 = arith.constant 0 : index
    %20 = vector.load %arg7[%c0_15, %c0_16] : memref<1x128xf32, #tpu.memory_space<vmem>>, vector<1x128xf32>
    %21 = vector.broadcast %20 : vector<1x128xf32> to vector<8x128xf32>
    %22 = arith.addf %19, %21 : vector<8x128xf32>
    %cst_17 = arith.constant dense<0xFF800000> : vector<8xf32>
    %23 = vector.multi_reduction <maximumf>, %22, %cst_17 [1] : vector<8x128xf32> to vector<8xf32>
    %24 = vector.shape_cast %23 : vector<8xf32> to vector<8x1xf32>
    %25 = vector.broadcast %24 : vector<8x1xf32> to vector<8x128xf32>
    %26 = arith.subf %22, %25 : vector<8x128xf32>
    %27 = math.exp %26 : vector<8x128xf32>
    %cst_18 = arith.constant dense<0.000000e+00> : vector<8xf32>
    %28 = vector.multi_reduction <add>, %27, %cst_18 [1] : vector<8x128xf32> to vector<8xf32>
    %29 = vector.shape_cast %28 : vector<8xf32> to vector<8x1xf32>
    %30 = vector.extract_strided_slice %27 {offsets = [0, 0], sizes = [8, 3], strides = [1, 1]} : vector<8x128xf32> to vector<8x3xf32>
    %31 = vector.broadcast %29 : vector<8x1xf32> to vector<8x3xf32>
    %32 = arith.divf %30, %31 : vector<8x3xf32>
    %c0_19 = arith.constant 0 : index
    %c0_20 = arith.constant 0 : index
    %33 = vector.load %arg8[%c0_19, %c0_20] : memref<8x3xf32, #tpu.memory_space<vmem>>, vector<8x3xf32>
    tpu.vector_store %arg8[%c0_19, %c0_20], %32 {strides = array<i32>} : memref<8x3xf32, #tpu.memory_space<vmem>>, vector<8x3xf32>,
    return
  }
  func.func @transform_0(%arg0: i32) -> (i32, i32) {
    %c0_i32 = arith.constant 0 : i32
    %c0_i32_0 = arith.constant 0 : i32
    return %arg0, %c0_i32 : i32, i32
  }
  func.func @transform_1(%arg0: i32) -> (i32, i32) {
    %c0_i32 = arith.constant 0 : i32
    %c0_i32_0 = arith.constant 0 : i32
    %c0_i32_1 = arith.constant 0 : i32
    return %c0_i32, %c0_i32_0 : i32, i32
  }
  func.func @transform_2(%arg0: i32) -> (i32, i32) {
    %c0_i32 = arith.constant 0 : i32
    %c0_i32_0 = arith.constant 0 : i32
    %c0_i32_1 = arith.constant 0 : i32
    return %c0_i32, %c0_i32_0 : i32, i32
  }
  func.func @transform_3(%arg0: i32) -> (i32, i32) {
    %c0_i32 = arith.constant 0 : i32
    %c0_i32_0 = arith.constant 0 : i32
    %c0_i32_1 = arith.constant 0 : i32
    return %c0_i32, %c0_i32_0 : i32, i32
  }
  func.func @transform_4(%arg0: i32) -> (i32, i32) {
    %c0_i32 = arith.constant 0 : i32
    %c0_i32_0 = arith.constant 0 : i32
    %c0_i32_1 = arith.constant 0 : i32
    return %c0_i32, %c0_i32_0 : i32, i32
  }
  func.func @transform_5(%arg0: i32) -> (i32, i32) {
    %c0_i32 = arith.constant 0 : i32
    %c0_i32_0 = arith.constant 0 : i32
    %c0_i32_1 = arith.constant 0 : i32
    return %c0_i32, %c0_i32_0 : i32, i32
  }
  func.func @transform_6(%arg0: i32) -> (i32, i32) {
    %c0_i32 = arith.constant 0 : i32
    %c0_i32_0 = arith.constant 0 : i32
    %c0_i32_1 = arith.constant 0 : i32
    return %c0_i32, %c0_i32_0 : i32, i32
  }
  func.func @transform_7(%arg0: i32) -> (i32, i32) {
    %c0_i32 = arith.constant 0 : i32
    %c0_i32_0 = arith.constant 0 : i32
    return %arg0, %c0_i32 : i32, i32
  }
}

</mosaic_0001>

<bundles_post_ra>
// kernel: tpu_custom_call.1
= control target key start
LH: loop header
LB: loop body
LE: loop exit
PB: predicated region body
PF: predicated region fallthrough
CT: control target
= control target key end

     0   :  { %vm41_vm0 = vcmask 130048   ;;  %vm96_vm1 = vcmask 523264   ;;  %vm135_vm2 = vcmask 261120   ;;  %vm174_vm7 = vcmask 23552   ;;  %s301_s1 = inlined_call_operand.vmem [shape: bf16[16,64], index: 1, kind: input, shape index: {}]   ;;  %s302_s0 = inlined_call_operand.vmem [shape: f32[8,16], index: 0, kind: input, shape index: {}]   ;;  %s303_s3 = inlined_call_operand.vmem [shape: bf16[64,32], index: 3, kind: input, shape index: {}]   ;;  %s304_s2 = inlined_call_operand.vmem [shape: f32[1,64], index: 2, kind: input, shape index: {}]   ;;  %s305_s4 = inlined_call_operand.vmem [shape: f32[1,32], index: 4, kind: input, shape index: {}]   ;;  %s306_s6 = inlined_call_operand.vmem [shape: f32[1,128], index: 6, kind: input, shape index: {}]   ;;  %s307_s5 = inlined_call_operand.vmem [shape: bf16[32,128], index: 5, kind: input, shape index: {}]   ;;  %s308_s7 = inlined_call_operand.vmem [shape: f32[8,3], index: 7, kind: output, shape index: {}]  }
   0x1   :  { %v211_v0 = vld [vmem:[%s301_s1] sm:$0xff]  ;;  %v215_v2 = vld [vmem:[%s303_s3 + $0x18] sm:$0xff]  ;;  %v214_v4 = vld [vmem:[%s303_s3 + $0x10] sm:$0xff] }
   0x2   :  { %v27_v1 = vld [vmem:[%s302_s0] sm:$0xff]  ;;  %52 = vmatpush.bf16.msra.mxu0 %v211_v0  ;;  %104 = vmatpush.bf16.msra.mxu1 %v215_v2  ;;  %v213_v5 = vld [vmem:[%s303_s3 + $0x8] sm:$0xff] }
   0x3   :  { %v28_v3 = vpack.c.bf16 %v27_v1, %v27_v1  ;;  %v212_v6 = vld [vmem:[%s303_s3] sm:$0xff]  ;;  %v217_v13 = vld [vmem:[%s307_s5 + $0x8] sm:$0xff] }
   0x4   :  { %v218_v7 = vld [vmem:[%s304_s2] ss:$0 sm:$0xff]  ;;  %145 = vmatpush.bf16.msra.mxu2 %v217_v13 }
   0x5   :  { %184 = vmatmul.msk.bf16.vlgmr.msra.gmra.mxu0 %vm41_vm0, %v28_v3  ;;  %v216_v14 = vld [vmem:[%s307_s5] sm:$0xff] }
   0x6   :  { %105 = vmatpush.bf16.msra.mxu1 %v214_v4  ;;  %v219_v15 = vld [vmem:[%s305_s4] ss:$0 sm:$0xff] }
   0x7   :  { %v220_v21 = vld [vmem:[%s306_s6] ss:$0 sm:$0xff] }
   0x8   :  { %146 = vmatpush.bf16.msra.mxu2 %v216_v14 }
   0xa   :  { %106 = vmatpush.bf16.msra.mxu1 %v213_v5 }
   0xe   :  { %107 = vmatpush.bf16.msra.mxu1 %v212_v6 }
  0x82   :  { %v54_v8 = vpop.f32.mrf.mxu0 }
  0x83   :  { %v55_v9 = vadd.f32 %v218_v7, %v54_v8 }
  0x85   :  { %v58_v10 = vmax.f32 %v55_v9, 0.0 }
  0x87   :  { %v59_v11 = vpack.c.bf16 %v58_v10, %v58_v10 }
  0x89   :  { %201 = vmatmul.msk.bf16.vlgmr.msra.gmra.mxu1 %vm96_vm1, %v59_v11 }
  0x8a   :  { %v56_v12 = vpop.f32.mrf.mxu0 }
 0x106   :  { %v109_v16 = vpop.f32.mrf.mxu1 }
 0x107   :  { %v110_v17 = vadd.f32 %v219_v15, %v109_v16 }
 0x109   :  { %v113_v18 = vmax.f32 %v110_v17, 0.0 }
 0x10b   :  { %v114_v19 = vpack.c.bf16 %v113_v18, %v113_v18 }
 0x10d   :  { %210 = vmatmul.msk.bf16.vlgmr.msra.gmra.mxu2 %vm135_vm2, %v114_v19 }
 0x10e   :  { %v111_v20 = vpop.f32.mrf.mxu1 }
 0x190   :  { %v148_v22 = vpop.f32.mrf.mxu2 }
 0x191   :  { %v149_v23 = vadd.f32 %v220_v21, %v148_v22 }
 0x193   :  { %152 = vmax.xlane.f32.xlu0 %v149_v23 }
 0x198   :  { %v150_v24 = vpop.f32.mrf.mxu2 }
 0x206   :  { %v153_v25 = vpop.xlane.xlu0 %152 }
 0x207   :  { %v154_v26 = vsub.f32 %v149_v23, %v153_v25 }
 0x209   :  { %v155_v27 = vmul.f32 1.442695, %v154_v26 }
 0x20b   :  { %221 = vpow2.f32 %v155_v27 }
 0x211   :  { %v222_v28 = vpop.eup %221 }
 0x212   :  { %157 = vadd.xlane.f32.xlu0 %v222_v28 }
 0x285   :  { %v158_v29 = vpop.xlane.xlu0 %157 }
 0x286   :  { %223 = vrcp.f32 %v158_v29  ;;  %v170_v33 = vand.u32 2147483648, %v158_v29  ;;  %v168_v35 = vand.u32 2147483647, %v158_v29  ;;  %vm164_vm4 = vweird.f32 %v158_v29 }
 0x288   :  { %v171_v37 = vor.u32 1.1754944e-38, %v170_v33  ;;  %vm169_vm6 = vcmp.eq.f32.partialorder %v168_v35, 8.507059e+37 }
 0x28c   :  { %v224_v30 = vpop.eup %223 }
 0x28d   :  { %v160_v31 = vmul.f32 %v224_v30, %v158_v29  ;;  %vm165_vm3 = vweird.f32 %v224_v30 }
 0x28e   :  { %vm166_vm5 = vmor %vm164_vm4, %vm165_vm3 }
 0x28f   :  { %v161_v32 = vsub.f32 1.0, %v160_v31 }
 0x291   :  { %v162_v34 = vmul.f32 %v224_v30, %v161_v32 }
 0x293   :  { %v163_v36 = vadd.f32 %v224_v30, %v162_v34 }
 0x295   :  { %v167_v38 = vsel %vm166_vm5, %v224_v30, %v163_v36 }
 0x296   :  { %v172_v39 = vsel %vm169_vm6, %v171_v37, %v167_v38 }
 0x297   :  { %v173_v40 = vmul.f32 %v222_v28, %v172_v39 }
 0x299   :  { %175 = vst.msk [vmem:[%s308_s7] sm:$0xff] %vm174_vm7, %v173_v40 }

</bundles_post_ra>
